<compile_context>
chip_gen: v7x
topology: tpu7x:2x2x1
jax: 0.10.0
libtpu: 0.0.40
codegen_flags: <defaults>
</compile_context>

<pallas_src>
import math

import jax
import jax.numpy as jnp
from jax.experimental import pallas as pl
from jax.experimental.pallas import tpu as pltpu


def _round_up(x, m):
    return ((x + m - 1) // m) * m


def _spiking_softmax_kernel(inp_ref, x0_ref, ypre0_ref,
                            out_ref, xnew_ref, ynew_ref,
                            x_sc, ypre_sc):
    """Grid = (row_tiles, T). State lives in f32 VMEM scratch across T."""
    t = pl.program_id(1)

    @pl.when(t == 0)
    def _init():
        x_sc[...] = x0_ref[...].astype(jnp.float32)
        ypre_sc[...] = ypre0_ref[...].astype(jnp.float32)

    # Accumulate running input state (f32 math regardless of I/O dtype).
    x_new = x_sc[...] + inp_ref[...].astype(jnp.float32)

    # Numerically-stable softmax along the last (lane) axis.
    m = jnp.max(x_new, axis=-1, keepdims=True)
    e = jnp.exp(x_new - m)
    s = jnp.sum(e, axis=-1, keepdims=True)
    y = e * pl.reciprocal(s)  # exact reciprocal + VPU multiply (no D-wide divide)

    # Spiking output: difference vs. previous softmax.
    out_ref[...] = (y - ypre_sc[...]).astype(out_ref.dtype)

    # Update resident state.
    x_sc[...] = x_new
    ypre_sc[...] = y

    @pl.when(t == pl.num_programs(1) - 1)
    def _finalize():
        xnew_ref[...] = x_sc[...].astype(xnew_ref.dtype)
        ynew_ref[...] = ypre_sc[...].astype(ynew_ref.dtype)


def _choose_tile_rows(R, D, io_itemsizes):
    """Pick a row tile: largest multiple of 8 whose double-buffered footprint
    fits a generation-aware VMEM budget (v7x has 64 MiB/TC vs 128 MiB)."""
    try:
        vmem_cap = int(pltpu.get_tpu_info().vmem_capacity_bytes)
    except Exception:
        vmem_cap = 64 * 1024 * 1024  # conservative fallback
    budget = vmem_cap // 4  # target for double-buffered blocks + scratch
    # Per-row VMEM bytes: 2 pipeline buffers per streamed array + 2 f32 scratch.
    per_row = D * (2 * sum(io_itemsizes) + 2 * 4)
    tr = budget // max(per_row, 1)
    tr = min(tr, 1024)               # diminishing returns past ~512-1024 rows
    tr = max(8, (tr // 8) * 8)
    tr = min(tr, _round_up(R, 8))    # don't exceed (padded) problem size
    return tr, vmem_cap


def spiking_softmax_multistep(inputs, x_state, y_pre, *, tile_rows=None):
    """Run T timesteps of spiking_softmax in one fused Pallas kernel.

    inputs : (T, ..., D)   per-timestep inputs (softmax over the last axis)
    x_state: (..., D)      running accumulation state X
    y_pre  : (..., D)      previous softmax output Y_pre

    Returns (outputs (T, ..., D), new_X, new_Y_pre), in the callers' dtypes.
    """
    T = inputs.shape[0]
    inner_shape = inputs.shape[1:]
    D = inner_shape[-1]
    R = math.prod(inner_shape[:-1]) if len(inner_shape) > 1 else 1

    inp2 = inputs.reshape(T, R, D)
    x2 = x_state.reshape(R, D)
    y2 = y_pre.reshape(R, D)

    io_itemsizes = [inp2.dtype.itemsize, x2.dtype.itemsize, y2.dtype.itemsize,
                    inp2.dtype.itemsize, x2.dtype.itemsize, y2.dtype.itemsize]
    if tile_rows is None:
        tr, vmem_cap = _choose_tile_rows(R, D, io_itemsizes)
    else:
        tr = max(8, (int(tile_rows) // 8) * 8)
        _, vmem_cap = _choose_tile_rows(R, D, io_itemsizes)

    r_pad = _round_up(R, tr)
    if r_pad != R:
        pad = r_pad - R
        inp2 = jnp.pad(inp2, ((0, 0), (0, pad), (0, 0)))
        x2 = jnp.pad(x2, ((0, pad), (0, 0)))
        y2 = jnp.pad(y2, ((0, pad), (0, 0)))

    # Per-timestep streamed blocks (T dim squeezed out of the kernel view).
    io_spec_t = pl.BlockSpec((None, tr, D), lambda i, t: (t, i, 0))
    # State blocks: fetched / written once per row tile (constant across T).
    state_spec = pl.BlockSpec((tr, D), lambda i, t: (i, 0))

    out, x_new, y_new = pl.pallas_call(
        _spiking_softmax_kernel,
        out_shape=(
            jax.ShapeDtypeStruct((T, r_pad, D), inp2.dtype),
            jax.ShapeDtypeStruct((r_pad, D), x2.dtype),
            jax.ShapeDtypeStruct((r_pad, D), y2.dtype),
        ),
        grid_spec=pltpu.PrefetchScalarGridSpec(
            num_scalar_prefetch=0,
            grid=(r_pad // tr, T),
            in_specs=[io_spec_t, state_spec, state_spec],
            out_specs=[io_spec_t, state_spec, state_spec],
            scratch_shapes=[pltpu.VMEM((tr, D), jnp.float32),   # X state
                            pltpu.VMEM((tr, D), jnp.float32)],  # Y_pre state
        ),
        input_output_aliases={1: 1, 2: 2},  # in-place X / Y_pre update
        compiler_params=pltpu.CompilerParams(
            dimension_semantics=("parallel", "arbitrary"),
            vmem_limit_bytes=int(vmem_cap // 2),
        ),
    )(inp2, x2, y2)

    if r_pad != R:
        out = out[:, :R]
        x_new = x_new[:R]
        y_new = y_new[:R]

    return (out.reshape(inputs.shape),
            x_new.reshape(inner_shape),
            y_new.reshape(inner_shape))


def spiking_softmax_step(inp, x_state, y_pre):
    """One timestep of spiking_softmax (stateful-module style API).

    Returns (output, new_X_state, new_Y_pre_state), all with inp's shape.
    """
    out, x_new, y_new = spiking_softmax_multistep(inp[None], x_state, y_pre)
    return out[0], x_new, y_new


if __name__ == "__main__":
    key = jax.random.PRNGKey(0)
    B, H, N, D = 2, 4, 16, 16  # attention-logit-like input, softmax over last dim
    k1, k2 = jax.random.split(key)
    x_t1 = jax.random.normal(k1, (B, H, N, D), dtype=jnp.float32)
    x_t2 = jax.random.normal(k2, (B, H, N, D), dtype=jnp.float32)

    # Pure-JAX reference of the PyTorch semantics (module starts with X=0, Y_pre=0).
    ref_X1 = x_t1
    ref_Y1 = jax.nn.softmax(ref_X1, axis=-1)
    ref_out1 = ref_Y1 - 0.0
    ref_X2 = ref_X1 + x_t2
    ref_Y2 = jax.nn.softmax(ref_X2, axis=-1)
    ref_out2 = ref_Y2 - ref_Y1

    # (a) Fused multi-timestep kernel: X / Y_pre stay resident in VMEM across T.
    zeros = jnp.zeros((B, H, N, D), jnp.float32)
    outs, X_f, Yp_f = spiking_softmax_multistep(jnp.stack([x_t1, x_t2]), zeros, zeros)
    jax.block_until_ready((outs, X_f, Yp_f))
    assert jnp.allclose(outs[0], ref_out1, atol=1e-5), "multistep t=1 mismatch"
    assert jnp.allclose(outs[1], ref_out2, atol=1e-5), "multistep t=2 mismatch"
    assert jnp.allclose(X_f, ref_X2, atol=1e-5), "multistep X state mismatch"
    assert jnp.allclose(Yp_f, ref_Y2, atol=1e-5), "multistep Y_pre state mismatch"

    # (b) Single-step API, called twice (exercises stateful accumulation).
    X = jnp.zeros((B, H, N, D), jnp.float32)
    Y_pre = jnp.zeros((B, H, N, D), jnp.float32)
    out1, X, Y_pre = spiking_softmax_step(x_t1, X, Y_pre)
    out2, X, Y_pre = spiking_softmax_step(x_t2, X, Y_pre)
    jax.block_until_ready((out1, out2, X, Y_pre))
    assert jnp.allclose(out1, ref_out1, atol=1e-5), "step t=1 mismatch"
    assert jnp.allclose(out2, ref_out2, atol=1e-5), "step t=2 mismatch"

    # (c) Native-dtype (bf16) I/O path: f32 math inside the kernel, bf16 in/out.
    xb1 = x_t1.astype(jnp.bfloat16).astype(jnp.float32)
    xb2 = x_t2.astype(jnp.bfloat16).astype(jnp.float32)
    ref_bY1 = jax.nn.softmax(xb1, axis=-1)
    ref_bY2 = jax.nn.softmax(xb1 + xb2, axis=-1)
    outs_bf, Xb, Ypb = spiking_softmax_multistep(
        jnp.stack([x_t1, x_t2]).astype(jnp.bfloat16),
        zeros.astype(jnp.bfloat16),
        zeros.astype(jnp.bfloat16))
    jax.block_until_ready((outs_bf, Xb, Ypb))
    assert outs_bf.dtype == jnp.bfloat16 and Xb.dtype == jnp.bfloat16
    assert jnp.allclose(outs_bf[0].astype(jnp.float32), ref_bY1, atol=1e-2)
    assert jnp.allclose(outs_bf[1].astype(jnp.float32), ref_bY2 - ref_bY1, atol=1e-2)

    print("KERNEL_OK")
</pallas_src>

<mosaic_0001>
module attributes {stable_mosaic.version = 11 : i64} {
  func.func @_spiking_softmax_kernel(%arg0: i32, %arg1: i32, %arg2: memref<1x128x16xf32, #tpu.memory_space<vmem>>, %arg3: memref<128x16xf32, #tpu.memory_space<vmem>>, %arg4: memref<128x16xf32, #tpu.memory_space<vmem>>, %arg5: memref<1x128x16xf32, #tpu.memory_space<vmem>>, %arg6: memref<128x16xf32, #tpu.memory_space<vmem>>, %arg7: memref<128x16xf32, #tpu.memory_space<vmem>>, %arg8: memref<128x16xf32, #tpu.memory_space<vmem>>, %arg9: memref<128x16xf32, #tpu.memory_space<vmem>>) attributes {dimension_semantics = [#tpu.dimension_semantics<parallel>, #tpu.dimension_semantics<arbitrary>], iteration_bounds = array<i64: 1, 2>, scalar_prefetch = 0 : i64, scratch_operands = 2 : i64, tpu.core_type = #tpu.core_type<tc>, window_params = [{transform_indices = @transform_0, window_bounds = array<i64: 1, 128, 16>}, {transform_indices = @transform_1, window_bounds = array<i64: 128, 16>}, {transform_indices = @transform_2, window_bounds = array<i64: 128, 16>}, {transform_indices = @transform_3, window_bounds = array<i64: 1, 128, 16>}, {transform_indices = @transform_4, window_bounds = array<i64: 128, 16>}, {transform_indices = @transform_5, window_bounds = array<i64: 128, 16>}]} {
    %c0_i32 = arith.constant 0 : i32
    %0 = arith.cmpi eq, %arg1, %c0_i32 : i32
    %1 = arith.extui %0 : i1 to i32
    %c0_i32_0 = arith.constant 0 : i32
    %2 = arith.cmpi ne, %1, %c0_i32_0 : i32
    scf.if %2 {
      %c0_16 = arith.constant 0 : index
      %c0_17 = arith.constant 0 : index
      %27 = vector.load %arg3[%c0_16, %c0_17] : memref<128x16xf32, #tpu.memory_space<vmem>>, vector<128x16xf32>
      %c0_18 = arith.constant 0 : index
      %c0_19 = arith.constant 0 : index
      %28 = vector.load %arg8[%c0_18, %c0_19] : memref<128x16xf32, #tpu.memory_space<vmem>>, vector<128x16xf32>
      tpu.vector_store %arg8[%c0_18, %c0_19], %27 {strides = array<i32>} : memref<128x16xf32, #tpu.memory_space<vmem>>, vector<128x16xf32>,
      %c0_20 = arith.constant 0 : index
      %c0_21 = arith.constant 0 : index
      %29 = vector.load %arg4[%c0_20, %c0_21] : memref<128x16xf32, #tpu.memory_space<vmem>>, vector<128x16xf32>
      %c0_22 = arith.constant 0 : index
      %c0_23 = arith.constant 0 : index
      %30 = vector.load %arg9[%c0_22, %c0_23] : memref<128x16xf32, #tpu.memory_space<vmem>>, vector<128x16xf32>
      tpu.vector_store %arg9[%c0_22, %c0_23], %29 {strides = array<i32>} : memref<128x16xf32, #tpu.memory_space<vmem>>, vector<128x16xf32>,
    } else {
    }
    %c0 = arith.constant 0 : index
    %c0_1 = arith.constant 0 : index
    %3 = vector.load %arg8[%c0, %c0_1] : memref<128x16xf32, #tpu.memory_space<vmem>>, vector<128x16xf32>
    %c0_2 = arith.constant 0 : index
    %c0_3 = arith.constant 0 : index
    %c0_4 = arith.constant 0 : index
    %4 = vector.load %arg2[%c0_2, %c0_3, %c0_4] : memref<1x128x16xf32, #tpu.memory_space<vmem>>, vector<1x128x16xf32>
    %5 = vector.shape_cast %4 : vector<1x128x16xf32> to vector<128x16xf32>
    %6 = arith.addf %3, %5 : vector<128x16xf32>
    %cst = arith.constant dense<0xFF800000> : vector<128xf32>
    %7 = vector.multi_reduction <maximumf>, %6, %cst [1] : vector<128x16xf32> to vector<128xf32>
    %8 = vector.shape_cast %7 : vector<128xf32> to vector<128x1xf32>
    %9 = vector.broadcast %8 : vector<128x1xf32> to vector<128x16xf32>
    %10 = arith.subf %6, %9 : vector<128x16xf32>
    %11 = math.exp %10 : vector<128x16xf32>
    %cst_5 = arith.constant dense<0.000000e+00> : vector<128xf32>
    %12 = vector.multi_reduction <add>, %11, %cst_5 [1] : vector<128x16xf32> to vector<128xf32>
    %13 = vector.shape_cast %12 : vector<128xf32> to vector<128x1xf32>
    %14 = tpu.reciprocal %13 : vector<128x1xf32> -> vector<128x1xf32>
    %15 = vector.broadcast %14 : vector<128x1xf32> to vector<128x16xf32>
    %16 = arith.mulf %11, %15 : vector<128x16xf32>
    %c0_6 = arith.constant 0 : index
    %c0_7 = arith.constant 0 : index
    %17 = vector.load %arg9[%c0_6, %c0_7] : memref<128x16xf32, #tpu.memory_space<vmem>>, vector<128x16xf32>
    %18 = arith.subf %16, %17 : vector<128x16xf32>
    %c0_8 = arith.constant 0 : index
    %c0_9 = arith.constant 0 : index
    %c0_10 = arith.constant 0 : index
    %19 = vector.load %arg5[%c0_8, %c0_9, %c0_10] : memref<1x128x16xf32, #tpu.memory_space<vmem>>, vector<1x128x16xf32>
    %20 = vector.shape_cast %19 : vector<1x128x16xf32> to vector<128x16xf32>
    %21 = vector.shape_cast %18 : vector<128x16xf32> to vector<1x128x16xf32>
    tpu.vector_store %arg5[%c0_8, %c0_9, %c0_10], %21 {strides = array<i32>} : memref<1x128x16xf32, #tpu.memory_space<vmem>>, vector<1x128x16xf32>,
    %c0_11 = arith.constant 0 : index
    %c0_12 = arith.constant 0 : index
    %22 = vector.load %arg8[%c0_11, %c0_12] : memref<128x16xf32, #tpu.memory_space<vmem>>, vector<128x16xf32>
    tpu.vector_store %arg8[%c0_11, %c0_12], %6 {strides = array<i32>} : memref<128x16xf32, #tpu.memory_space<vmem>>, vector<128x16xf32>,
    %c0_13 = arith.constant 0 : index
    %c0_14 = arith.constant 0 : index
    %23 = vector.load %arg9[%c0_13, %c0_14] : memref<128x16xf32, #tpu.memory_space<vmem>>, vector<128x16xf32>
    tpu.vector_store %arg9[%c0_13, %c0_14], %16 {strides = array<i32>} : memref<128x16xf32, #tpu.memory_space<vmem>>, vector<128x16xf32>,
    %c1_i32 = arith.constant 1 : i32
    %24 = arith.cmpi eq, %arg1, %c1_i32 : i32
    %25 = arith.extui %24 : i1 to i32
    %c0_i32_15 = arith.constant 0 : i32
    %26 = arith.cmpi ne, %25, %c0_i32_15 : i32
    scf.if %26 {
      %c0_16 = arith.constant 0 : index
      %c0_17 = arith.constant 0 : index
      %27 = vector.load %arg8[%c0_16, %c0_17] : memref<128x16xf32, #tpu.memory_space<vmem>>, vector<128x16xf32>
      %c0_18 = arith.constant 0 : index
      %c0_19 = arith.constant 0 : index
      %28 = vector.load %arg6[%c0_18, %c0_19] : memref<128x16xf32, #tpu.memory_space<vmem>>, vector<128x16xf32>
      tpu.vector_store %arg6[%c0_18, %c0_19], %27 {strides = array<i32>} : memref<128x16xf32, #tpu.memory_space<vmem>>, vector<128x16xf32>,
      %c0_20 = arith.constant 0 : index
      %c0_21 = arith.constant 0 : index
      %29 = vector.load %arg9[%c0_20, %c0_21] : memref<128x16xf32, #tpu.memory_space<vmem>>, vector<128x16xf32>
      %c0_22 = arith.constant 0 : index
      %c0_23 = arith.constant 0 : index
      %30 = vector.load %arg7[%c0_22, %c0_23] : memref<128x16xf32, #tpu.memory_space<vmem>>, vector<128x16xf32>
      tpu.vector_store %arg7[%c0_22, %c0_23], %29 {strides = array<i32>} : memref<128x16xf32, #tpu.memory_space<vmem>>, vector<128x16xf32>,
    } else {
    }
    return
  }
  func.func @transform_0(%arg0: i32, %arg1: i32) -> (i32, i32, i32) {
    %c0_i32 = arith.constant 0 : i32
    %c0_i32_0 = arith.constant 0 : i32
    return %arg1, %arg0, %c0_i32 : i32, i32, i32
  }
  func.func @transform_1(%arg0: i32, %arg1: i32) -> (i32, i32) {
    %c0_i32 = arith.constant 0 : i32
    %c0_i32_0 = arith.constant 0 : i32
    return %arg0, %c0_i32 : i32, i32
  }
  func.func @transform_2(%arg0: i32, %arg1: i32) -> (i32, i32) {
    %c0_i32 = arith.constant 0 : i32
    %c0_i32_0 = arith.constant 0 : i32
    return %arg0, %c0_i32 : i32, i32
  }
  func.func @transform_3(%arg0: i32, %arg1: i32) -> (i32, i32, i32) {
    %c0_i32 = arith.constant 0 : i32
    %c0_i32_0 = arith.constant 0 : i32
    return %arg1, %arg0, %c0_i32 : i32, i32, i32
  }
  func.func @transform_4(%arg0: i32, %arg1: i32) -> (i32, i32) {
    %c0_i32 = arith.constant 0 : i32
    %c0_i32_0 = arith.constant 0 : i32
    return %arg0, %c0_i32 : i32, i32
  }
  func.func @transform_5(%arg0: i32, %arg1: i32) -> (i32, i32) {
    %c0_i32 = arith.constant 0 : i32
    %c0_i32_0 = arith.constant 0 : i32
    return %arg0, %c0_i32 : i32, i32
  }
}

</mosaic_0001>

<bundles_post_ra>
// kernel: tpu_custom_call.1
= control target key start
LH: loop header
LB: loop body
LE: loop exit
PB: predicated region body
PF: predicated region fallthrough
CT: control target
= control target key end

     0   :  { %s1119_s18 = smov 0   ;;  %s1121_s19 = smov 0   ;;  %s1674_s0 = inlined_call_operand.vmem [shape: f32[2,128,16], index: 0, kind: input, shape index: {}]   ;;  %s1675_s1 = inlined_call_operand.vmem [shape: f32[128,16], index: 1, kind: input, shape index: {}, may-alias: {1,4}]   ;;  %s1676_s2 = inlined_call_operand.vmem [shape: f32[128,16], index: 2, kind: input, shape index: {}, may-alias: {2,5}]   ;;  %s1677_s3 = inlined_call_operand.vmem [shape: f32[2,128,16], index: 3, kind: output, shape index: {0}]   ;;  %s1678_s4 = inlined_call_operand.vmem [shape: f32[128,16], index: 4, kind: output, shape index: {1}, may-alias: {1,4}]   ;;  %s1679_s5 = inlined_call_operand.vmem [shape: f32[128,16], index: 5, kind: output, shape index: {2}, may-alias: {2,5}]  }
   0x1   :  { %s1123_s20 = smov 0  }
   0x2 LB: > { %s25_s21 = sadd.s32 1, %s1083_s19  ;;  %p962_p0 = scmp.ge.s32.totalorder %s1087_s20, 1  ;;  %s1087_s20 = sphi %s1123_s20, %s16_s20   ;;  %s1083_s19 = sphi %s1121_s19, %s1681_s19   ;;  %s1079_s18 = sphi %s1119_s18, %s1680_s18  }
   0x3   : > { %p26_p1 = scmp.ge.s32.totalorder %s25_s21, 2  ;;  %p235_p2 = scmp.lt.s32.totalorder %s1087_s20, 3 }
   0x5   : > { %s1683_s21 = smov (%p26_p1, %s25_s21), 0  ;;  %p236_p3 = pnand %p962_p0, %p235_p2 }
   0x6   : > { %p292_p4 = scmp.lt.s32.totalorder (!%p236_p3), %s1079_s18, 1  ;;  %p967_p5 = scmp.ne.s32.totalorder (!%p236_p3), %s1079_s18, 0 }
   0x7   : > { %239 = sbr.rel (%p236_p3) target bundleno = 391 (0x187), region = 32 }
   0xe   : > { %s293_s22 = scalar_select %p292_p4, %s1079_s18, 1 }
   0xf   : > { %338 = sbr.rel (%p967_p5) target bundleno = 32 (0x20), region = 36  ;;  %v339_v0 = vld [vmem:[%s1675_s1] sm:$0xff] (!%p967_p5)  ;;  %vm355_vm0 = vcmask (!%p967_p5), 130048   ;;  %v340_v1 = vld [vmem:[%s1675_s1 + $0x8] sm:$0xff] (!%p967_p5)  ;;  %v341_v2 = vld [vmem:[%s1675_s1 + $0x10] sm:$0xff] (!%p967_p5) }
  0x10   : > { %s975_s23 = sshll.u32 %s293_s22, 7  ;;  %356 = vst.msk [vmem:[#allocation2] sm:$0xff] (!%p967_p5), %vm355_vm0, %v339_v0  ;;  %357 = vst.msk [vmem:[#allocation2 + $0x8] sm:$0xff] (!%p967_p5), %vm355_vm0, %v340_v1  ;;  %v342_v3 = vld [vmem:[%s1675_s1 + $0x18] sm:$0xff] (!%p967_p5)  ;;  %v343_v4 = vld [vmem:[%s1675_s1 + $0x20] sm:$0xff] (!%p967_p5) }
  0x11   : > { %s1144_s26 = scalar_lea.vmem %s1674_s0, %s975_s23  ;;  %s1149_s29 = scalar_lea.vmem %s1677_s3, %s975_s23  ;;  %358 = vst.msk [vmem:[#allocation2 + $0x10] sm:$0xff] (!%p967_p5), %vm355_vm0, %v341_v2  ;;  %v344_v5 = vld [vmem:[%s1675_s1 + $0x28] sm:$0xff] (!%p967_p5)  ;;  %359 = vst.msk [vmem:[#allocation2 + $0x18] sm:$0xff] (!%p967_p5), %vm355_vm0, %v342_v3  ;;  %v345_v6 = vld [vmem:[%s1675_s1 + $0x30] sm:$0xff] (!%p967_p5) }
  0x12   : > { %360 = vst.msk [vmem:[#allocation2 + $0x20] sm:$0xff] (!%p967_p5), %vm355_vm0, %v343_v4  ;;  %361 = vst.msk [vmem:[#allocation2 + $0x28] sm:$0xff] (!%p967_p5), %vm355_vm0, %v344_v5  ;;  %v346_v7 = vld [vmem:[%s1675_s1 + $0x38] sm:$0xff] (!%p967_p5)  ;;  %v347_v8 = vld [vmem:[%s1675_s1 + $0x40] sm:$0xff] (!%p967_p5) }
  0x13   : > { %362 = vst.msk [vmem:[#allocation2 + $0x30] sm:$0xff] (!%p967_p5), %vm355_vm0, %v345_v6  ;;  %363 = vst.msk [vmem:[#allocation2 + $0x38] sm:$0xff] (!%p967_p5), %vm355_vm0, %v346_v7  ;;  %v348_v9 = vld [vmem:[%s1675_s1 + $0x48] sm:$0xff] (!%p967_p5)  ;;  %v349_v10 = vld [vmem:[%s1675_s1 + $0x50] sm:$0xff] (!%p967_p5) }
  0x14   : > { %364 = vst.msk [vmem:[#allocation2 + $0x40] sm:$0xff] (!%p967_p5), %vm355_vm0, %v347_v8  ;;  %v350_v11 = vld [vmem:[%s1675_s1 + $0x58] sm:$0xff] (!%p967_p5)  ;;  %365 = vst.msk [vmem:[#allocation2 + $0x48] sm:$0xff] (!%p967_p5), %vm355_vm0, %v348_v9  ;;  %v351_v12 = vld [vmem:[%s1675_s1 + $0x60] sm:$0xff] (!%p967_p5) }
  0x15   : > { %366 = vst.msk [vmem:[#allocation2 + $0x50] sm:$0xff] (!%p967_p5), %vm355_vm0, %v349_v10  ;;  %367 = vst.msk [vmem:[#allocation2 + $0x58] sm:$0xff] (!%p967_p5), %vm355_vm0, %v350_v11  ;;  %v352_v13 = vld [vmem:[%s1675_s1 + $0x68] sm:$0xff] (!%p967_p5)  ;;  %v353_v14 = vld [vmem:[%s1675_s1 + $0x70] sm:$0xff] (!%p967_p5) }
  0x16   : > { %368 = vst.msk [vmem:[#allocation2 + $0x60] sm:$0xff] %vm355_vm0, %v351_v12  ;;  %369 = vst.msk [vmem:[#allocation2 + $0x68] sm:$0xff] %vm355_vm0, %v352_v13  ;;  %v354_v15 = vld [vmem:[%s1675_s1 + $0x78] sm:$0xff]  ;;  %v372_v16 = vld [vmem:[%s1676_s2] sm:$0xff] }
  0x17   : > { %370 = vst.msk [vmem:[#allocation2 + $0x70] sm:$0xff] %vm355_vm0, %v353_v14  ;;  %v373_v17 = vld [vmem:[%s1676_s2 + $0x8] sm:$0xff]  ;;  %371 = vst.msk [vmem:[#allocation2 + $0x78] sm:$0xff] %vm355_vm0, %v354_v15  ;;  %v374_v18 = vld [vmem:[%s1676_s2 + $0x10] sm:$0xff] }
  0x18   : > { %388 = vst.msk [vmem:[#allocation3] sm:$0xff] %vm355_vm0, %v372_v16  ;;  %389 = vst.msk [vmem:[#allocation3 + $0x8] sm:$0xff] %vm355_vm0, %v373_v17  ;;  %v375_v19 = vld [vmem:[%s1676_s2 + $0x18] sm:$0xff]  ;;  %v376_v20 = vld [vmem:[%s1676_s2 + $0x20] sm:$0xff] }
  0x19   : > { %390 = vst.msk [vmem:[#allocation3 + $0x10] sm:$0xff] %vm355_vm0, %v374_v18  ;;  %391 = vst.msk [vmem:[#allocation3 + $0x18] sm:$0xff] %vm355_vm0, %v375_v19  ;;  %v377_v21 = vld [vmem:[%s1676_s2 + $0x28] sm:$0xff]  ;;  %v378_v22 = vld [vmem:[%s1676_s2 + $0x30] sm:$0xff] }
  0x1a   : > { %392 = vst.msk [vmem:[#allocation3 + $0x20] sm:$0xff] %vm355_vm0, %v376_v20  ;;  %v379_v23 = vld [vmem:[%s1676_s2 + $0x38] sm:$0xff]  ;;  %393 = vst.msk [vmem:[#allocation3 + $0x28] sm:$0xff] %vm355_vm0, %v377_v21  ;;  %v380_v24 = vld [vmem:[%s1676_s2 + $0x40] sm:$0xff] }
  0x1b   : > { %394 = vst.msk [vmem:[#allocation3 + $0x30] sm:$0xff] %vm355_vm0, %v378_v22  ;;  %395 = vst.msk [vmem:[#allocation3 + $0x38] sm:$0xff] %vm355_vm0, %v379_v23  ;;  %v381_v25 = vld [vmem:[%s1676_s2 + $0x48] sm:$0xff]  ;;  %v382_v26 = vld [vmem:[%s1676_s2 + $0x50] sm:$0xff] }
  0x1c   : > { %396 = vst.msk [vmem:[#allocation3 + $0x40] sm:$0xff] %vm355_vm0, %v380_v24  ;;  %397 = vst.msk [vmem:[#allocation3 + $0x48] sm:$0xff] %vm355_vm0, %v381_v25  ;;  %v383_v27 = vld [vmem:[%s1676_s2 + $0x58] sm:$0xff]  ;;  %v384_v28 = vld [vmem:[%s1676_s2 + $0x60] sm:$0xff] }
  0x1d   : > { %398 = vst.msk [vmem:[#allocation3 + $0x50] sm:$0xff] %vm355_vm0, %v382_v26  ;;  %v385_v29 = vld [vmem:[%s1676_s2 + $0x68] sm:$0xff]  ;;  %399 = vst.msk [vmem:[#allocation3 + $0x58] sm:$0xff] %vm355_vm0, %v383_v27  ;;  %v386_v30 = vld [vmem:[%s1676_s2 + $0x70] sm:$0xff] }
  0x1e   : > { %400 = vst.msk [vmem:[#allocation3 + $0x60] sm:$0xff] %vm355_vm0, %v384_v28  ;;  %401 = vst.msk [vmem:[#allocation3 + $0x68] sm:$0xff] %vm355_vm0, %v385_v29  ;;  %v387_v31 = vld [vmem:[%s1676_s2 + $0x78] sm:$0xff] }
  0x1f   : > { %402 = vst.msk [vmem:[#allocation3 + $0x70] sm:$0xff] %vm355_vm0, %v386_v30  ;;  %403 = vst.msk [vmem:[#allocation3 + $0x78] sm:$0xff] %vm355_vm0, %v387_v31 }
  0x20 PF: > { %v420_v33 = vld [vmem:[%s1144_s26] sm:$0xff]  ;;  %vm452_vm1 = vcmask 130048   ;;  %v422_v36 = vld [vmem:[%s1144_s26 + $0x10] sm:$0xff]  ;;  %v421_v38 = vld [vmem:[%s1144_s26 + $0x8] sm:$0xff]  ;;  %p968_p6 = scmp.ne.s32.totalorder %s1079_s18, 1 }
  0x21   : > { %v404_v32 = vld [vmem:[#allocation2] sm:$0xff]  ;;  %v405_v37 = vld [vmem:[#allocation2 + $0x8] sm:$0xff]  ;;  %v423_v42 = vld [vmem:[%s1144_s26 + $0x18] sm:$0xff] }
  0x22   : > { %v406_v34 = vld [vmem:[#allocation2 + $0x10] sm:$0xff]  ;;  %v1281_v35 = vadd.f32 %v420_v33, %v404_v32  ;;  %v1287_v40 = vadd.f32 %v421_v38, %v405_v37  ;;  %v407_v41 = vld [vmem:[#allocation2 + $0x18] sm:$0xff]  ;;  %v424_v46 = vld [vmem:[%s1144_s26 + $0x20] sm:$0xff] }
  0x23   : > { %v1285_v39 = vadd.f32 %v422_v36, %v406_v34  ;;  %v408_v43 = vld [vmem:[#allocation2 + $0x20] sm:$0xff]  ;;  %v1294_v45 = vadd.f32 %v423_v42, %v407_v41  ;;  %v409_v47 = vld [vmem:[#allocation2 + $0x28] sm:$0xff]  ;;  %v426_v53 = vld [vmem:[%s1144_s26 + $0x30] sm:$0xff] }
  0x24   : > { %v453_v44 = vsel %vm452_vm1, %v1281_v35, -inf  ;;  %677 = vst.msk [vmem:[#allocation2] sm:$0xff] %vm452_vm1, %v1281_v35  ;;  %v425_v48 = vld [vmem:[%s1144_s26 + $0x28] sm:$0xff]  ;;  %678 = vst.msk [vmem:[#allocation2 + $0x8] sm:$0xff] %vm452_vm1, %v1287_v40  ;;  %v1304_v50 = vadd.f32 %v424_v46, %v408_v43  ;;  %v410_v52 = vld [vmem:[#allocation2 + $0x30] sm:$0xff]  ;;  %v456_v55 = vsel %vm452_vm1, %v1287_v40, -inf }
  0x25   : > { %454 = vmax.xlane.f32.xlu0 %v453_v44  ;;  %v459_v49 = vsel %vm452_vm1, %v1285_v39, -inf  ;;  %679 = vst.msk [vmem:[#allocation2 + $0x10] sm:$0xff] %vm452_vm1, %v1285_v39  ;;  %v1306_v51 = vadd.f32 %v425_v48, %v409_v47  ;;  %v411_v54 = vld [vmem:[#allocation2 + $0x38] sm:$0xff]  ;;  %680 = vst.msk [vmem:[#allocation2 + $0x18] sm:$0xff] %vm452_vm1, %v1294_v45  ;;  %v1313_v56 = vadd.f32 %v426_v53, %v410_v52  ;;  %v412_v58 = vld [vmem:[#allocation2 + $0x40] sm:$0xff]  ;;  %v462_v60 = vsel %vm452_vm1, %v1294_v45, -inf }
  0x26   : > { %460 = vmax.xlane.f32.xlu1 %v459_v49  ;;  %v427_v57 = vld [vmem:[%s1144_s26 + $0x38] sm:$0xff]  ;;  %v428_v59 = vld [vmem:[%s1144_s26 + $0x40] sm:$0xff]  ;;  %681 = vst.msk [vmem:[#allocation2 + $0x20] sm:$0xff] %vm452_vm1, %v1304_v50  ;;  %v413_v63 = vld [vmem:[#allocation2 + $0x48] sm:$0xff]  ;;  %v465_v11 = vsel %vm452_vm1, %v1304_v50, -inf }
  0x27   : > { %682 = vst.msk [vmem:[#allocation2 + $0x28] sm:$0xff] %vm452_vm1, %v1306_v51  ;;  %v1323_v61 = vadd.f32 %v427_v57, %v411_v54  ;;  %v1325_v62 = vadd.f32 %v428_v59, %v412_v58  ;;  %v429_v0 = vld [vmem:[%s1144_s26 + $0x48] sm:$0xff]  ;;  %v414_v1 = vld [vmem:[#allocation2 + $0x50] sm:$0xff]  ;;  %683 = vst.msk [vmem:[#allocation2 + $0x30] sm:$0xff] %vm452_vm1, %v1313_v56  ;;  %v468_v16 = vsel %vm452_vm1, %v1306_v51, -inf  ;;  %v471_v22 = vsel %vm452_vm1, %v1313_v56, -inf }
  0x28   : > { %v1330_v2 = vadd.f32 %v429_v0, %v413_v63  ;;  %v430_v3 = vld [vmem:[%s1144_s26 + $0x50] sm:$0xff]  ;;  %v415_v4 = vld [vmem:[#allocation2 + $0x58] sm:$0xff]  ;;  %v416_v8 = vld [vmem:[#allocation2 + $0x60] sm:$0xff] }
  0x29   : > { %v431_v5 = vld [vmem:[%s1144_s26 + $0x58] sm:$0xff]  ;;  %457 = vmax.xlane.f32.xlu0 %v456_v55  ;;  %684 = vst.msk [vmem:[#allocation2 + $0x38] sm:$0xff] %vm452_vm1, %v1323_v61  ;;  %685 = vst.msk [vmem:[#allocation2 + $0x40] sm:$0xff] %vm452_vm1, %v1325_v62  ;;  %v1338_v6 = vadd.f32 %v430_v3, %v414_v1  ;;  %v432_v9 = vld [vmem:[%s1144_s26 + $0x60] sm:$0xff]  ;;  %v474_v23 = vsel %vm452_vm1, %v1323_v61, -inf  ;;  %v477_v24 = vsel %vm452_vm1, %v1325_v62, -inf }
  0x2a   : > { %v1340_v7 = vadd.f32 %v431_v5, %v415_v4  ;;  %v417_v10 = vld [vmem:[#allocation2 + $0x68] sm:$0xff]  ;;  %463 = vmax.xlane.f32.xlu1 %v462_v60  ;;  %686 = vst.msk [vmem:[#allocation2 + $0x48] sm:$0xff] %vm452_vm1, %v1330_v2  ;;  %v1347_v12 = vadd.f32 %v432_v9, %v416_v8  ;;  %v418_v14 = vld [vmem:[#allocation2 + $0x70] sm:$0xff]  ;;  %v419_v19 = vld [vmem:[#allocation2 + $0x78] sm:$0xff]  ;;  %v480_v25 = vsel %vm452_vm1, %v1330_v2, -inf }
  0x2b   : > { %v433_v13 = vld [vmem:[%s1144_s26 + $0x68] sm:$0xff]  ;;  %v434_v15 = vld [vmem:[%s1144_s26 + $0x70] sm:$0xff]  ;;  %687 = vst.msk [vmem:[#allocation2 + $0x50] sm:$0xff] %vm452_vm1, %v1338_v6  ;;  %v435_v20 = vld [vmem:[%s1144_s26 + $0x78] sm:$0xff]  ;;  %v483_v26 = vsel %vm452_vm1, %v1338_v6, -inf }
  0x2c   : > { %688 = vst.msk [vmem:[#allocation2 + $0x58] sm:$0xff] %vm452_vm1, %v1340_v7  ;;  %v1357_v17 = vadd.f32 %v433_v13, %v417_v10  ;;  %v1359_v18 = vadd.f32 %v434_v15, %v418_v14  ;;  %689 = vst.msk [vmem:[#allocation2 + $0x60] sm:$0xff] %vm452_vm1, %v1347_v12  ;;  %v1364_v21 = vadd.f32 %v435_v20, %v419_v19  ;;  %v486_v27 = vsel %vm452_vm1, %v1340_v7, -inf }
  0x2d   : > { %466 = vmax.xlane.f32.xlu0 %v465_v11  ;;  %v489_v28 = vsel %vm452_vm1, %v1347_v12, -inf }
  0x2e   : > { %690 = vst.msk [vmem:[#allocation2 + $0x68] sm:$0xff] %vm452_vm1, %v1357_v17  ;;  %691 = vst.msk [vmem:[#allocation2 + $0x70] sm:$0xff] %vm452_vm1, %v1359_v18  ;;  %469 = vmax.xlane.f32.xlu1 %v468_v16  ;;  %v492_v29 = vsel %vm452_vm1, %v1357_v17, -inf  ;;  %v495_v30 = vsel %vm452_vm1, %v1359_v18, -inf  ;;  %v498_v31 = vsel %vm452_vm1, %v1364_v21, -inf }
  0x2f   : > { %692 = vst.msk [vmem:[#allocation2 + $0x78] sm:$0xff] %vm452_vm1, %v1364_v21 }
  0x31   : > { %472 = vmax.xlane.f32.xlu0 %v471_v22 }
  0x32   : > { %475 = vmax.xlane.f32.xlu1 %v474_v23 }
  0x35   : > { %478 = vmax.xlane.f32.xlu0 %v477_v24 }
  0x36   : > { %481 = vmax.xlane.f32.xlu1 %v480_v25 }
  0x39   : > { %484 = vmax.xlane.f32.xlu0 %v483_v26 }
  0x3a   : > { %487 = vmax.xlane.f32.xlu1 %v486_v27 }
  0x3d   : > { %490 = vmax.xlane.f32.xlu0 %v489_v28 }
  0x3e   : > { %493 = vmax.xlane.f32.xlu1 %v492_v29 }
  0x41   : > { %496 = vmax.xlane.f32.xlu0 %v495_v30 }
  0x42   : > { %499 = vmax.xlane.f32.xlu1 %v498_v31 }
  0xb2   : > { %v455_v32 = vpop.xlane.xlu0 %454 }
  0xb3   : > { %v501_v33 = vsub.f32 %v1281_v35, %v455_v32  ;;  %v461_v34 = vpop.xlane.xlu1 %460 }
  0xb4   : > { %v503_v36 = vsub.f32 %v1285_v39, %v461_v34 }
  0xb5   : > { %v517_v37 = vmul.f32 1.442695, %v501_v33 }
  0xb6   : > { %v521_v38 = vmul.f32 1.442695, %v503_v36  ;;  %v458_v41 = vpop.xlane.xlu0 %457 }
  0xb7   : > { %1001 = vpow2.f32 %v517_v37  ;;  %v502_v42 = vsub.f32 %v1287_v40, %v458_v41  ;;  %v464_v43 = vpop.xlane.xlu1 %463 }
  0xb8   : > { %1003 = vpow2.f32 %v521_v38  ;;  %v504_v44 = vsub.f32 %v1294_v45, %v464_v43 }
  0xb9   : > { %v519_v46 = vmul.f32 1.442695, %v502_v42 }
  0xba   : > { %v523_v47 = vmul.f32 1.442695, %v504_v44  ;;  %v467_v48 = vpop.xlane.xlu0 %466 }
  0xbb   : > { %1005 = vpow2.f32 %v519_v46  ;;  %v505_v49 = vsub.f32 %v1304_v50, %v467_v48  ;;  %v470_v35 = vpop.xlane.xlu1 %469 }
  0xbc   : > { %1007 = vpow2.f32 %v523_v47  ;;  %v506_v39 = vsub.f32 %v1306_v51, %v470_v35 }
  0xbd   : > { %v525_v52 = vmul.f32 1.442695, %v505_v49 }
  0xbe   : > { %v527_v53 = vmul.f32 1.442695, %v506_v39  ;;  %v473_v54 = vpop.xlane.xlu0 %472 }
  0xbf   : > { %1009 = vpow2.f32 %v525_v52  ;;  %v507_v40 = vsub.f32 %v1313_v56, %v473_v54  ;;  %v476_v55 = vpop.xlane.xlu1 %475 }
  0xc0   : > { %1011 = vpow2.f32 %v527_v53  ;;  %v508_v45 = vsub.f32 %v1323_v61, %v476_v55 }
  0xc1   : > { %v1400_v57 = vpop.eup %1001  ;;  %v529_v58 = vmul.f32 1.442695, %v507_v40 }
  0xc2   : > { %v1402_v59 = vpop.eup %1003  ;;  %v531_v50 = vmul.f32 1.442695, %v508_v45  ;;  %v479_v60 = vpop.xlane.xlu0 %478  ;;  %v549_v51 = vsel %vm452_vm1, %v1400_v57, 0.0 }
  0xc3   : > { %1013 = vpow2.f32 %v529_v58  ;;  %v509_v63 = vsub.f32 %v1325_v62, %v479_v60  ;;  %550 = vadd.xlane.f32.xlu0 %v549_v51  ;;  %v482_v0 = vpop.xlane.xlu1 %481  ;;  %v555_v61 = vsel %vm452_vm1, %v1402_v59, 0.0  ;;  %v629_v58 = vld [vmem:[#allocation3] sm:$0xff] }
  0xc4   : > { %1015 = vpow2.f32 %v531_v50  ;;  %v510_v56 = vsub.f32 %v1330_v2, %v482_v0 }
  0xc5   : > { %v1410_v1 = vpop.eup %1005  ;;  %v533_v3 = vmul.f32 1.442695, %v509_v63 }
  0xc6   : > { %v1412_v4 = vpop.eup %1007  ;;  %v535_v5 = vmul.f32 1.442695, %v510_v56  ;;  %v485_v8 = vpop.xlane.xlu0 %484  ;;  %v552_v9 = vsel %vm452_vm1, %v1410_v1, 0.0  ;;  %v630_v56 = vld [vmem:[#allocation3 + $0x8] sm:$0xff] }
  0xc7   : > { %1017 = vpow2.f32 %v533_v3  ;;  %v511_v62 = vsub.f32 %v1338_v6, %v485_v8  ;;  %556 = vadd.xlane.f32.xlu0 %v555_v61  ;;  %553 = vadd.xlane.f32.xlu1 %v552_v9  ;;  %v488_v10 = vpop.xlane.xlu1 %487  ;;  %v558_v11 = vsel %vm452_vm1, %v1412_v4, 0.0 }
  0xc8   : > { %1019 = vpow2.f32 %v535_v5  ;;  %v512_v2 = vsub.f32 %v1340_v7, %v488_v10  ;;  %v631_v5 = vld [vmem:[#allocation3 + $0x10] sm:$0xff] }
  0xc9   : > { %v1420_v13 = vpop.eup %1009  ;;  %v537_v14 = vmul.f32 1.442695, %v511_v62 }
  0xca   : > { %v1422_v15 = vpop.eup %1011  ;;  %v539_v16 = vmul.f32 1.442695, %v512_v2  ;;  %v491_v19 = vpop.xlane.xlu0 %490  ;;  %v561_v20 = vsel %vm452_vm1, %v1420_v13, 0.0 }
  0xcb   : > { %1021 = vpow2.f32 %v537_v14  ;;  %v513_v6 = vsub.f32 %v1347_v12, %v491_v19  ;;  %559 = vadd.xlane.f32.xlu1 %v558_v11  ;;  %562 = vadd.xlane.f32.xlu0 %v561_v20  ;;  %v494_v22 = vpop.xlane.xlu1 %493  ;;  %v564_v23 = vsel %vm452_vm1, %v1422_v15, 0.0  ;;  %v632_v11 = vld [vmem:[#allocation3 + $0x18] sm:$0xff] }
  0xcc   : > { %1023 = vpow2.f32 %v539_v16  ;;  %v514_v7 = vsub.f32 %v1357_v17, %v494_v22  ;;  %v633_v16 = vld [vmem:[#allocation3 + $0x20] sm:$0xff] }
  0xcd   : > { %v1430_v24 = vpop.eup %1013  ;;  %v541_v25 = vmul.f32 1.442695, %v513_v6 }
  0xce   : > { %v1432_v26 = vpop.eup %1015  ;;  %v543_v27 = vmul.f32 1.442695, %v514_v7  ;;  %v497_v28 = vpop.xlane.xlu0 %496  ;;  %v567_v29 = vsel %vm452_vm1, %v1430_v24, 0.0 }
  0xcf   : > { %1025 = vpow2.f32 %v541_v25  ;;  %v515_v12 = vsub.f32 %v1359_v18, %v497_v28  ;;  %565 = vadd.xlane.f32.xlu1 %v564_v23  ;;  %568 = vadd.xlane.f32.xlu0 %v567_v29  ;;  %v500_v30 = vpop.xlane.xlu1 %499  ;;  %v570_v31 = vsel %vm452_vm1, %v1432_v26, 0.0  ;;  %v634_v23 = vld [vmem:[#allocation3 + $0x28] sm:$0xff] }
  0xd0   : > { %1027 = vpow2.f32 %v543_v27  ;;  %v516_v17 = vsub.f32 %v1364_v21, %v500_v30  ;;  %v635_v27 = vld [vmem:[#allocation3 + $0x30] sm:$0xff] }
  0xd1   : > { %v1440_v32 = vpop.eup %1017  ;;  %v545_v33 = vmul.f32 1.442695, %v515_v12 }
  0xd2   : > { %v1442_v34 = vpop.eup %1019  ;;  %v547_v36 = vmul.f32 1.442695, %v516_v17  ;;  %v573_v37 = vsel %vm452_vm1, %v1440_v32, 0.0 }
  0xd3   : > { %1029 = vpow2.f32 %v545_v33  ;;  %571 = vadd.xlane.f32.xlu1 %v570_v31  ;;  %574 = vadd.xlane.f32.xlu0 %v573_v37  ;;  %v576_v18 = vsel %vm452_vm1, %v1442_v34, 0.0  ;;  %v636_v31 = vld [vmem:[#allocation3 + $0x38] sm:$0xff] }
  0xd4   : > { %1031 = vpow2.f32 %v547_v36  ;;  %v637_v36 = vld [vmem:[#allocation3 + $0x40] sm:$0xff] }
  0xd5   : > { %v1448_v21 = vpop.eup %1021 }
  0xd6   : > { %v1450_v38 = vpop.eup %1023  ;;  %v579_v41 = vsel %vm452_vm1, %v1448_v21, 0.0 }
  0xd7   : > { %577 = vadd.xlane.f32.xlu1 %v576_v18  ;;  %580 = vadd.xlane.f32.xlu0 %v579_v41  ;;  %v582_v42 = vsel %vm452_vm1, %v1450_v38, 0.0 }
  0xd9   : > { %v1456_v43 = vpop.eup %1025 }
  0xda   : > { %v1458_v44 = vpop.eup %1027  ;;  %v585_v46 = vsel %vm452_vm1, %v1456_v43, 0.0 }
  0xdb   : > { %583 = vadd.xlane.f32.xlu1 %v582_v42  ;;  %586 = vadd.xlane.f32.xlu0 %v585_v46  ;;  %v588_v47 = vsel %vm452_vm1, %v1458_v44, 0.0 }
  0xdd   : > { %v1464_v48 = vpop.eup %1029 }
  0xde   : > { %v1466_v49 = vpop.eup %1031  ;;  %v591_v35 = vsel %vm452_vm1, %v1464_v48, 0.0 }
  0xdf   : > { %589 = vadd.xlane.f32.xlu1 %v588_v47  ;;  %592 = vadd.xlane.f32.xlu0 %v591_v35  ;;  %v594_v39 = vsel %vm452_vm1, %v1466_v49, 0.0  ;;  %v638_v47 = vld [vmem:[#allocation3 + $0x48] sm:$0xff] }
  0xe3   : > { %595 = vadd.xlane.f32.xlu1 %v594_v39  ;;  %v639_v39 = vld [vmem:[#allocation3 + $0x50] sm:$0xff] }
 0x150   : > { %v551_v52 = vpop.xlane.xlu0 %550 }
 0x151   : > { %1033 = vrcp.f32 %v551_v52 }
 0x154   : > { %v554_v53 = vpop.xlane.xlu1 %553  ;;  %v557_v54 = vpop.xlane.xlu0 %556 }
 0x155   : > { %1035 = vrcp.f32 %v554_v53 }
 0x156   : > { %1037 = vrcp.f32 %v557_v54 }
 0x158   : > { %v560_v40 = vpop.xlane.xlu1 %559  ;;  %v563_v55 = vpop.xlane.xlu0 %562 }
 0x159   : > { %1039 = vrcp.f32 %v560_v40 }
 0x15a   : > { %1041 = vrcp.f32 %v563_v55  ;;  %v640_v55 = vld [vmem:[#allocation3 + $0x58] sm:$0xff] }
 0x15b   : > { %v1034_v45 = vpop.eup %1033 }
 0x15c   : > { %v613_v50 = vmul.f32 %v1034_v45, %v1400_v57  ;;  %v566_v60 = vpop.xlane.xlu1 %565  ;;  %v569_v51 = vpop.xlane.xlu0 %568 }
 0x15d   : > { %1043 = vrcp.f32 %v566_v60 }
 0x15e   : > { %v645_v63 = vsub.f32 %v613_v50, %v629_v58  ;;  %693 = vst.msk [vmem:[#allocation3] sm:$0xff] %vm452_vm1, %v613_v50  ;;  %1045 = vrcp.f32 %v569_v51  ;;  %v641_v58 = vld [vmem:[#allocation3 + $0x60] sm:$0xff] }
 0x15f   : > { %v1036_v0 = vpop.eup %1035 }
 0x160   : > { %v1038_v61 = vpop.eup %1037  ;;  %661 = vst.msk [vmem:[%s1149_s29] sm:$0xff] %vm452_vm1, %v645_v63  ;;  %v614_v3 = vmul.f32 %v1036_v0, %v1410_v1  ;;  %v572_v8 = vpop.xlane.xlu1 %571  ;;  %v642_v63 = vld [vmem:[#allocation3 + $0x68] sm:$0xff] }
 0x161   : > { %v575_v9 = vpop.xlane.xlu0 %574  ;;  %v615_v57 = vmul.f32 %v1038_v61, %v1402_v59  ;;  %1047 = vrcp.f32 %v572_v8  ;;  %v644_v8 = vld [vmem:[#allocation3 + $0x78] sm:$0xff] }
 0x162   : > { %v646_v62 = vsub.f32 %v614_v3, %v630_v56  ;;  %694 = vst.msk [vmem:[#allocation3 + $0x8] sm:$0xff] %vm452_vm1, %v614_v3  ;;  %1049 = vrcp.f32 %v575_v9  ;;  %v643_v56 = vld [vmem:[#allocation3 + $0x70] sm:$0xff] }
 0x163   : > { %v1040_v10 = vpop.eup %1039  ;;  %v647_v2 = vsub.f32 %v615_v57, %v631_v5  ;;  %695 = vst.msk [vmem:[#allocation3 + $0x10] sm:$0xff] %vm452_vm1, %v615_v57  ;;  %v714_v57 = vld [vmem:[#allocation2 + $0x8] sm:$0xff] (!%p968_p6) }
 0x164   : > { %v1042_v14 = vpop.eup %1041  ;;  %662 = vst.msk [vmem:[%s1149_s29 + $0x8] sm:$0xff] %vm452_vm1, %v646_v62  ;;  %v616_v1 = vmul.f32 %v1040_v10, %v1412_v4  ;;  %v578_v19 = vpop.xlane.xlu1 %577  ;;  %v715_v62 = vld [vmem:[#allocation2 + $0x10] sm:$0xff] (!%p968_p6)  ;;  %730 = vst.msk [vmem:[%s1678_s4 + $0x8] sm:$0xff] (!%p968_p6), %vm452_vm1, %v714_v57  ;;  %v717_v10 = vld [vmem:[#allocation2 + $0x20] sm:$0xff] (!%p968_p6) }
 0x165   : > { %v581_v20 = vpop.xlane.xlu0 %580  ;;  %663 = vst.msk [vmem:[%s1149_s29 + $0x10] sm:$0xff] %vm452_vm1, %v647_v2  ;;  %v617_v59 = vmul.f32 %v1042_v14, %v1420_v13  ;;  %1051 = vrcp.f32 %v578_v19  ;;  %731 = vst.msk [vmem:[%s1678_s4 + $0x10] sm:$0xff] (!%p968_p6), %vm452_vm1, %v715_v62  ;;  %v718_v2 = vld [vmem:[#allocation2 + $0x28] sm:$0xff] (!%p968_p6)  ;;  %v720_v14 = vld [vmem:[#allocation2 + $0x38] sm:$0xff] (!%p968_p6) }
 0x166   : > { %v648_v6 = vsub.f32 %v616_v1, %v632_v11  ;;  %696 = vst.msk [vmem:[#allocation3 + $0x18] sm:$0xff] %vm452_vm1, %v616_v1  ;;  %1053 = vrcp.f32 %v581_v20  ;;  %733 = vst.msk [vmem:[%s1678_s4 + $0x20] sm:$0xff] (!%p968_p6), %vm452_vm1, %v717_v10  ;;  %v719_v11 = vld [vmem:[#allocation2 + $0x30] sm:$0xff] (!%p968_p6)  ;;  %v721_v1 = vld [vmem:[#allocation2 + $0x40] sm:$0xff] (!%p968_p6) }
 0x167   : > { %v1044_v22 = vpop.eup %1043  ;;  %v649_v7 = vsub.f32 %v617_v59, %v633_v16  ;;  %697 = vst.msk [vmem:[#allocation3 + $0x20] sm:$0xff] %vm452_vm1, %v617_v59  ;;  %734 = vst.msk [vmem:[%s1678_s4 + $0x28] sm:$0xff] (!%p968_p6), %vm452_vm1, %v718_v2  ;;  %v722_v16 = vld [vmem:[#allocation2 + $0x48] sm:$0xff] (!%p968_p6)  ;;  %v723_v19 = vld [vmem:[#allocation2 + $0x50] sm:$0xff] (!%p968_p6) }
 0x168   : > { %v1046_v25 = vpop.eup %1045  ;;  %664 = vst.msk [vmem:[%s1149_s29 + $0x18] sm:$0xff] %vm452_vm1, %v648_v6  ;;  %v618_v4 = vmul.f32 %v1044_v22, %v1422_v15  ;;  %v584_v28 = vpop.xlane.xlu1 %583  ;;  %735 = vst.msk [vmem:[%s1678_s4 + $0x30] sm:$0xff] (!%p968_p6), %vm452_vm1, %v719_v11  ;;  %v724_v20 = vld [vmem:[#allocation2 + $0x58] sm:$0xff] (!%p968_p6)  ;;  %v725_v59 = vld [vmem:[#allocation2 + $0x60] sm:$0xff] (!%p968_p6) }
 0x169   : > { %v587_v29 = vpop.xlane.xlu0 %586  ;;  %665 = vst.msk [vmem:[%s1149_s29 + $0x20] sm:$0xff] %vm452_vm1, %v649_v7  ;;  %v619_v13 = vmul.f32 %v1046_v25, %v1430_v24  ;;  %1055 = vrcp.f32 %v584_v28  ;;  %736 = vst.msk [vmem:[%s1678_s4 + $0x38] sm:$0xff] (!%p968_p6), %vm452_vm1, %v720_v14  ;;  %v726_v6 = vld [vmem:[#allocation2 + $0x68] sm:$0xff] (!%p968_p6)  ;;  %v727_v22 = vld [vmem:[#allocation2 + $0x70] sm:$0xff] (!%p968_p6) }
 0x16a   : > { %v650_v12 = vsub.f32 %v618_v4, %v634_v23  ;;  %698 = vst.msk [vmem:[#allocation3 + $0x28] sm:$0xff] %vm452_vm1, %v618_v4  ;;  %1057 = vrcp.f32 %v587_v29  ;;  %737 = vst.msk [vmem:[%s1678_s4 + $0x40] sm:$0xff] (!%p968_p6), %vm452_vm1, %v721_v1  ;;  %v728_v7 = vld [vmem:[#allocation2 + $0x78] sm:$0xff] (!%p968_p6)  ;;  %v745_v23 = vld [vmem:[#allocation3] sm:$0xff] (!%p968_p6) }
 0x16b   : > { %v1048_v30 = vpop.eup %1047  ;;  %v651_v17 = vsub.f32 %v619_v13, %v635_v27  ;;  %699 = vst.msk [vmem:[#allocation3 + $0x30] sm:$0xff] %vm452_vm1, %v619_v13  ;;  %738 = vst.msk [vmem:[%s1678_s4 + $0x48] sm:$0xff] (!%p968_p6), %vm452_vm1, %v722_v16  ;;  %v746_v25 = vld [vmem:[#allocation3 + $0x8] sm:$0xff] (!%p968_p6)  ;;  %v747_v4 = vld [vmem:[#allocation3 + $0x10] sm:$0xff] (!%p968_p6) }
 0x16c   : > { %v1050_v33 = vpop.eup %1049  ;;  %666 = vst.msk [vmem:[%s1149_s29 + $0x28] sm:$0xff] %vm452_vm1, %v650_v12  ;;  %v620_v15 = vmul.f32 %v1048_v30, %v1432_v26  ;;  %v590_v37 = vpop.xlane.xlu1 %589  ;;  %739 = vst.msk [vmem:[%s1678_s4 + $0x50] sm:$0xff] (!%p968_p6), %vm452_vm1, %v723_v19 }
 0x16d   : > { %v593_v18 = vpop.xlane.xlu0 %592  ;;  %667 = vst.msk [vmem:[%s1149_s29 + $0x30] sm:$0xff] %vm452_vm1, %v651_v17  ;;  %v621_v24 = vmul.f32 %v1050_v33, %v1440_v32  ;;  %1059 = vrcp.f32 %v590_v37  ;;  %740 = vst.msk [vmem:[%s1678_s4 + $0x58] sm:$0xff] (!%p968_p6), %vm452_vm1, %v724_v20  ;;  %v748_v27 = vld [vmem:[#allocation3 + $0x18] sm:$0xff] (!%p968_p6) }
 0x16e   : > { %v652_v41 = vsub.f32 %v620_v15, %v636_v31  ;;  %700 = vst.msk [vmem:[#allocation3 + $0x38] sm:$0xff] %vm452_vm1, %v620_v15  ;;  %1061 = vrcp.f32 %v593_v18  ;;  %741 = vst.msk [vmem:[%s1678_s4 + $0x60] sm:$0xff] (!%p968_p6), %vm452_vm1, %v725_v59  ;;  %v749_v28 = vld [vmem:[#allocation3 + $0x20] sm:$0xff] (!%p968_p6) }
 0x16f   : > { %v1052_v42 = vpop.eup %1051  ;;  %v653_v46 = vsub.f32 %v621_v24, %v637_v36  ;;  %701 = vst.msk [vmem:[#allocation3 + $0x40] sm:$0xff] %vm452_vm1, %v621_v24  ;;  %742 = vst.msk [vmem:[%s1678_s4 + $0x68] sm:$0xff] (!%p968_p6), %vm452_vm1, %v726_v6 }
 0x170   : > { %v1054_v26 = vpop.eup %1053  ;;  %668 = vst.msk [vmem:[%s1149_s29 + $0x38] sm:$0xff] %vm452_vm1, %v652_v41  ;;  %v622_v35 = vmul.f32 %v1052_v42, %v1442_v34  ;;  %v596_v52 = vpop.xlane.xlu1 %595  ;;  %743 = vst.msk [vmem:[%s1678_s4 + $0x70] sm:$0xff] (!%p968_p6), %vm452_vm1, %v727_v22 }
 0x171   : > { %669 = vst.msk [vmem:[%s1149_s29 + $0x40] sm:$0xff] %vm452_vm1, %v653_v46  ;;  %v623_v32 = vmul.f32 %v1054_v26, %v1448_v21  ;;  %1063 = vrcp.f32 %v596_v52  ;;  %744 = vst.msk [vmem:[%s1678_s4 + $0x78] sm:$0xff] (!%p968_p6), %vm452_vm1, %v728_v7  ;;  %v750_v29 = vld [vmem:[#allocation3 + $0x28] sm:$0xff] (!%p968_p6) }
 0x172   : > { %v654_v53 = vsub.f32 %v622_v35, %v638_v47  ;;  %702 = vst.msk [vmem:[#allocation3 + $0x48] sm:$0xff] %vm452_vm1, %v622_v35  ;;  %761 = vst.msk [vmem:[%s1679_s5] sm:$0xff] (!%p968_p6), %vm452_vm1, %v745_v23  ;;  %v751_v13 = vld [vmem:[#allocation3 + $0x30] sm:$0xff] (!%p968_p6) }
 0x173   : > { %v1056_v54 = vpop.eup %1055  ;;  %v655_v40 = vsub.f32 %v623_v32, %v639_v39  ;;  %703 = vst.msk [vmem:[#allocation3 + $0x50] sm:$0xff] %vm452_vm1, %v623_v32  ;;  %762 = vst.msk [vmem:[%s1679_s5 + $0x8] sm:$0xff] (!%p968_p6), %vm452_vm1, %v746_v25 }
 0x174   : > { %v1058_v45 = vpop.eup %1057  ;;  %670 = vst.msk [vmem:[%s1149_s29 + $0x48] sm:$0xff] %vm452_vm1, %v654_v53  ;;  %v624_v34 = vmul.f32 %v1056_v54, %v1450_v38  ;;  %763 = vst.msk [vmem:[%s1679_s5 + $0x10] sm:$0xff] (!%p968_p6), %vm452_vm1, %v747_v4 }
 0x175   : > { %671 = vst.msk [vmem:[%s1149_s29 + $0x50] sm:$0xff] %vm452_vm1, %v655_v40  ;;  %v625_v21 = vmul.f32 %v1058_v45, %v1456_v43  ;;  %764 = vst.msk [vmem:[%s1679_s5 + $0x18] sm:$0xff] (!%p968_p6), %vm452_vm1, %v748_v27  ;;  %v752_v12 = vld [vmem:[#allocation3 + $0x38] sm:$0xff] (!%p968_p6) }
 0x176   : > { %v656_v50 = vsub.f32 %v624_v34, %v640_v55  ;;  %704 = vst.msk [vmem:[#allocation3 + $0x58] sm:$0xff] %vm452_vm1, %v624_v34  ;;  %765 = vst.msk [vmem:[%s1679_s5 + $0x20] sm:$0xff] (!%p968_p6), %vm452_vm1, %v749_v28  ;;  %v753_v30 = vld [vmem:[#allocation3 + $0x40] sm:$0xff] (!%p968_p6) }
 0x177   : > { %v1060_v60 = vpop.eup %1059  ;;  %v657_v51 = vsub.f32 %v625_v21, %v641_v58  ;;  %705 = vst.msk [vmem:[#allocation3 + $0x60] sm:$0xff] %vm452_vm1, %v625_v21  ;;  %766 = vst.msk [vmem:[%s1679_s5 + $0x28] sm:$0xff] (!%p968_p6), %vm452_vm1, %v750_v29 }
 0x178   : > { %v1062_v0 = vpop.eup %1061  ;;  %672 = vst.msk [vmem:[%s1149_s29 + $0x58] sm:$0xff] %vm452_vm1, %v656_v50  ;;  %v626_v38 = vmul.f32 %v1060_v60, %v1458_v44  ;;  %767 = vst.msk [vmem:[%s1679_s5 + $0x30] sm:$0xff] (!%p968_p6), %vm452_vm1, %v751_v13 }
 0x179   : > { %673 = vst.msk [vmem:[%s1149_s29 + $0x60] sm:$0xff] %vm452_vm1, %v657_v51  ;;  %v627_v43 = vmul.f32 %v1062_v0, %v1464_v48  ;;  %v713_v48 = vld [vmem:[#allocation2] sm:$0xff] (!%p968_p6)  ;;  %768 = vst.msk [vmem:[%s1679_s5 + $0x38] sm:$0xff] (!%p968_p6), %vm452_vm1, %v752_v12  ;;  %v754_v17 = vld [vmem:[#allocation3 + $0x48] sm:$0xff] (!%p968_p6) }
 0x17a   : > { %v658_v61 = vsub.f32 %v626_v38, %v642_v63  ;;  %706 = vst.msk [vmem:[#allocation3 + $0x68] sm:$0xff] %vm452_vm1, %v626_v38  ;;  %712 = sbr.rel (%p968_p6) target bundleno = 391 (0x187), region = 40  ;;  %729 = vst.msk [vmem:[%s1678_s4] sm:$0xff] (!%p968_p6), %vm452_vm1, %v713_v48  ;;  %v755_v31 = vld [vmem:[#allocation3 + $0x50] sm:$0xff] (!%p968_p6) }
 0x17b   : > { %v1064_v3 = vpop.eup %1063  ;;  %v659_v5 = vsub.f32 %v627_v43, %v643_v56  ;;  %707 = vst.msk [vmem:[#allocation3 + $0x70] sm:$0xff] %vm452_vm1, %v627_v43  ;;  %769 = vst.msk [vmem:[%s1679_s5 + $0x40] sm:$0xff] (!%p968_p6), %vm452_vm1, %v753_v30 }
 0x17c   : > { %674 = vst.msk [vmem:[%s1149_s29 + $0x68] sm:$0xff] %vm452_vm1, %v658_v61  ;;  %v628_v9 = vmul.f32 %v1064_v3, %v1466_v49  ;;  %v716_v49 = vld [vmem:[#allocation2 + $0x18] sm:$0xff] (!%p968_p6)  ;;  %770 = vst.msk [vmem:[%s1679_s5 + $0x48] sm:$0xff] (!%p968_p6), %vm452_vm1, %v754_v17 }
 0x17d   : > { %675 = vst.msk [vmem:[%s1149_s29 + $0x70] sm:$0xff] %vm452_vm1, %v659_v5  ;;  %732 = vst.msk [vmem:[%s1678_s4 + $0x18] sm:$0xff] (!%p968_p6), %vm452_vm1, %v716_v49  ;;  %v756_v33 = vld [vmem:[#allocation3 + $0x58] sm:$0xff] (!%p968_p6) }
 0x17e   : > { %v660_v44 = vsub.f32 %v628_v9, %v644_v8  ;;  %708 = vst.msk [vmem:[#allocation3 + $0x78] sm:$0xff] %vm452_vm1, %v628_v9  ;;  %771 = vst.msk [vmem:[%s1679_s5 + $0x50] sm:$0xff] (!%p968_p6), %vm452_vm1, %v755_v31  ;;  %v757_v15 = vld [vmem:[#allocation3 + $0x60] sm:$0xff] (!%p968_p6) }
 0x17f   : > { %772 = vst.msk [vmem:[%s1679_s5 + $0x58] sm:$0xff] (!%p968_p6), %vm452_vm1, %v756_v33  ;;  %773 = vst.msk [vmem:[%s1679_s5 + $0x60] sm:$0xff] (!%p968_p6), %vm452_vm1, %v757_v15 }
 0x180   : > { %676 = vst.msk [vmem:[%s1149_s29 + $0x78] sm:$0xff] %vm452_vm1, %v660_v44 }
 0x181   : > { %v758_v36 = vld [vmem:[#allocation3 + $0x68] sm:$0xff] }
 0x182   : > { %774 = vst.msk [vmem:[%s1679_s5 + $0x68] sm:$0xff] %vm452_vm1, %v758_v36  ;;  %v759_v37 = vld [vmem:[#allocation3 + $0x70] sm:$0xff] }
 0x183   : > { %775 = vst.msk [vmem:[%s1679_s5 + $0x70] sm:$0xff] %vm452_vm1, %v759_v37 }
 0x185   : > { %v760_v18 = vld [vmem:[#allocation3 + $0x78] sm:$0xff] }
 0x186   : > { %776 = vst.msk [vmem:[%s1679_s5 + $0x78] sm:$0xff] %vm452_vm1, %v760_v18 }
 0x187 PF: > { %s16_s20 = sadd.s32 1, %s1087_s20   ;;  %s1680_s18 = smov %s1083_s19 }
 0x188   : > { %p13_p7 = scmp.ge.s32.totalorder %s16_s20, 4   ;;  %s1681_s19 = smov %s1683_s21 }
 0x18a   :  { %15 = sbr.rel (!%p13_p7) target bundleno = 2 (0x2), region = 100 }

</bundles_post_ra>
